<compile_context>
chip_gen: v7x
topology: tpu7x:2x2x1
jax: 0.10.0
libtpu: 0.0.40
codegen_flags: <defaults>
</compile_context>

<pallas_src>
import functools
import math

import jax
import jax.numpy as jnp
from jax import lax
from jax.experimental import pallas as pl
from jax.experimental.pallas import tpu as pltpu


_MAX_TILE_ROWS = 8192


@functools.lru_cache(maxsize=None)
def _vmem_budgets():
    """(vmem_limit_bytes, io_budget_bytes), generation-aware."""
    try:
        cap = int(pltpu.get_tpu_info().vmem_capacity_bytes)
    except Exception:  # conservative default if the query is unavailable
        cap = 64 * 1024 * 1024
    if cap >= 96 * 1024 * 1024:
        # v5e / v6e: 128 MiB physical VMEM -> big tiles, fewer grid steps.
        return 64 * 1024 * 1024, 28 * 1024 * 1024
    # v7x: 64 MiB per TensorCore -> stay well clear of the ceiling.
    return 44 * 1024 * 1024, 16 * 1024 * 1024


def _round_up(n: int, m: int) -> int:
    return -(-n // m) * m


def _pick_tile_rows(total_rows: int, lane_dim: int, itemsize: int,
                    io_budget: int) -> int:
    """Largest row tile keeping double-buffered in/out + f32 temps in budget."""
    if itemsize >= 4:
        mult = 8          # f32: 8 sublanes per vreg
    elif itemsize == 2:
        mult = 16         # bf16 packs 16 rows per vreg
    else:
        mult = 32         # int8/fp8
    # 2x double-buffered input + output (4*itemsize) plus ~3 f32 working copies
    # (x, centered, y) live inside the kernel body.
    bytes_per_row = lane_dim * (4 * itemsize + 12)
    tile = io_budget // max(bytes_per_row, 1)
    tile = max(mult, min(_MAX_TILE_ROWS, (tile // mult) * mult))
    if total_rows <= tile:
        if total_rows > 2 * mult:
            # Split into >=2 grid steps so both v7x TensorCores get work.
            half = _round_up(-(-total_rows // 2), mult)
            if half < total_rows:
                return half
        return total_rows          # single full-extent block (always legal)
    return tile


def _bf16_terms(v_f32, n_terms):
    """Split an f32 array into n_terms bf16 arrays whose sum ~= the original."""
    terms = []
    r = v_f32
    for _ in range(n_terms - 1):
        t = r.astype(jnp.bfloat16)
        terms.append(t)
        r = r - t.astype(jnp.float32)
    terms.append(r.astype(jnp.bfloat16))
    return terms


def _seg_dot(v_f32, s_bf16, n_terms):
    """Segmented mean (and lane-broadcast) via bf16 MXU dots, f32 accumulation."""
    acc = None
    for t in _bf16_terms(v_f32, n_terms):
        d = jnp.dot(t, s_bf16, preferred_element_type=jnp.float32)
        acc = d if acc is None else acc + d
    return acc


def _layernorm_rows_kernel(x_ref, g_ref, b_ref, o_ref, *, eps: float):
    # x_ref: (tile_rows, dim); g_ref/b_ref: (1, dim)
    x = x_ref[...].astype(jnp.float32)
    inv_n = 1.0 / x.shape[-1]
    sx = jnp.sum(x, axis=-1, keepdims=True)
    sxx = jnp.sum(x * x, axis=-1, keepdims=True)
    mean = sx * inv_n
    var = jnp.maximum(sxx * inv_n - mean * mean, 0.0)
    inv = lax.rsqrt(var + eps)
    y = (x - mean) * inv * g_ref[...].astype(jnp.float32) + b_ref[...].astype(jnp.float32)
    o_ref[...] = y.astype(o_ref.dtype)


def _layernorm_packed_kernel(x_ref, s_ref, g_ref, b_ref, o_ref, *,
                             eps: float, n_terms: int):
    # x_ref: (tile_rows, 128) with k = 128//dim original rows packed per lane-row.
    # s_ref: (128, 128) bf16 block-diagonal segment matrix, value 1/dim (exact).
    # g_ref/b_ref: (1, 128) = gamma/beta tiled k times.
    x = x_ref[...].astype(jnp.float32)
    s = s_ref[...]
    mean = _seg_dot(x, s, n_terms)                 # segmented mean, lane-broadcast
    centered = x - mean
    var = _seg_dot(centered * centered, s, n_terms)
    inv = lax.rsqrt(var + eps)
    y = centered * inv * g_ref[...].astype(jnp.float32) + b_ref[...].astype(jnp.float32)
    o_ref[...] = y.astype(o_ref.dtype)


def _layer_norm_rows(x2, gamma, beta, eps):
    rows, dim = x2.shape
    vmem_limit, io_budget = _vmem_budgets()
    tile = _pick_tile_rows(rows, dim, x2.dtype.itemsize, io_budget)
    grid = (pl.cdiv(rows, tile),)
    return pl.pallas_call(
        functools.partial(_layernorm_rows_kernel, eps=eps),
        out_shape=jax.ShapeDtypeStruct((rows, dim), x2.dtype),
        grid_spec=pltpu.PrefetchScalarGridSpec(
            num_scalar_prefetch=0,
            grid=grid,
            in_specs=[
                pl.BlockSpec((tile, dim), lambda i: (i, 0)),
                pl.BlockSpec((1, dim), lambda i: (0, 0)),
                pl.BlockSpec((1, dim), lambda i: (0, 0)),
            ],
            out_specs=pl.BlockSpec((tile, dim), lambda i: (i, 0)),
        ),
        compiler_params=pltpu.CompilerParams(
            dimension_semantics=("parallel",),
            vmem_limit_bytes=vmem_limit,
        ),
    )(x2, gamma.reshape(1, dim), beta.reshape(1, dim))


def _layer_norm_packed(x2, gamma, beta, eps):
    rows, dim = x2.shape
    k = 128 // dim
    packed_rows = rows // k
    xp = x2.reshape(packed_rows, 128)              # k rows per lane-row, lane-dense
    g = jnp.tile(gamma.reshape(1, dim), (1, k))    # lane j -> gamma[j % dim]
    b = jnp.tile(beta.reshape(1, dim), (1, k))
    seg = jnp.arange(128, dtype=jnp.int32) // dim
    # 1/dim is a power of two for every dim dividing 128 -> exact in bf16.
    s = jnp.where(seg[:, None] == seg[None, :], 1.0 / dim, 0.0).astype(jnp.bfloat16)

    n_terms = 3 if x2.dtype.itemsize >= 4 else 1
    vmem_limit, io_budget = _vmem_budgets()
    tile = _pick_tile_rows(packed_rows, 128, x2.dtype.itemsize, io_budget)
    grid = (pl.cdiv(packed_rows, tile),)
    out = pl.pallas_call(
        functools.partial(_layernorm_packed_kernel, eps=eps, n_terms=n_terms),
        out_shape=jax.ShapeDtypeStruct((packed_rows, 128), x2.dtype),
        grid_spec=pltpu.PrefetchScalarGridSpec(
            num_scalar_prefetch=0,
            grid=grid,
            in_specs=[
                pl.BlockSpec((tile, 128), lambda i: (i, 0)),
                pl.BlockSpec((128, 128), lambda i: (0, 0)),
                pl.BlockSpec((1, 128), lambda i: (0, 0)),
                pl.BlockSpec((1, 128), lambda i: (0, 0)),
            ],
            out_specs=pl.BlockSpec((tile, 128), lambda i: (i, 0)),
        ),
        compiler_params=pltpu.CompilerParams(
            dimension_semantics=("parallel",),
            vmem_limit_bytes=vmem_limit,
        ),
    )(xp, s, g, b)
    return out.reshape(rows, dim)


def layer_norm(x, gamma, beta, *, eps: float = 1e-12):
    """LayerNorm over the last axis of x (any number of leading dims).

    Default eps=1e-12 matches the module's variance_epsilon default (which
    overrides torch.nn.LayerNorm's 1e-5).
    """
    orig_shape = x.shape
    dim = orig_shape[-1]
    rows = math.prod(orig_shape[:-1]) if len(orig_shape) > 1 else 1
    x2 = x.reshape(rows, dim)

    if dim < 128 and 128 % dim == 0 and rows >= (128 // dim):
        k = 128 // dim
        main = (rows // k) * k
        out_main = _layer_norm_packed(x2[:main], gamma, beta, eps)
        if main == rows:
            out = out_main
        else:
            # Ragged tail (< k rows): tiny rows-path call instead of giving up
            # the lane-dense packed path for the whole tensor.
            out_tail = _layer_norm_rows(x2[main:], gamma, beta, eps)
            out = jnp.concatenate([out_main, out_tail], axis=0)
    else:
        out = _layer_norm_rows(x2, gamma, beta, eps)
    return out.reshape(orig_shape)


def _reference_layer_norm(x, gamma, beta, eps=1e-12):
    xf = x.astype(jnp.float32)
    mean = jnp.mean(xf, axis=-1, keepdims=True)
    var = jnp.mean((xf - mean) ** 2, axis=-1, keepdims=True)
    return ((xf - mean) * lax.rsqrt(var + eps) * gamma + beta).astype(x.dtype)


if __name__ == "__main__":
    # cfg.dim = 32; input (batch=2, seq=8, dim=32)
    batch, seq, dim = 2, 8, 32
    key = jax.random.PRNGKey(0)
    kx, kg, kb = jax.random.split(key, 3)

    x = jax.random.normal(kx, (batch, seq, dim), dtype=jnp.float32)
    # nn.LayerNorm default init: weight = ones, bias = zeros. Perturb slightly so
    # the affine part is exercised.
    gamma = jnp.ones((dim,), jnp.float32) + 0.1 * jax.random.normal(kg, (dim,))
    beta = jnp.zeros((dim,), jnp.float32) + 0.1 * jax.random.normal(kb, (dim,))

    y = layer_norm(x, gamma, beta, eps=1e-12)   # module's variance_epsilon default
    y = jax.block_until_ready(y)

    y_ref = _reference_layer_norm(x, gamma, beta, eps=1e-12)
    assert y.shape == x.shape and y.dtype == x.dtype
    assert jnp.max(jnp.abs(y - y_ref)) < 1e-5, "mismatch vs reference"

    print("KERNEL_OK")
</pallas_src>

<mosaic_0001>
module attributes {stable_mosaic.version = 11 : i64} {
  func.func @_layernorm_packed_kernel(%arg0: i32, %arg1: memref<4x128xf32, #tpu.memory_space<vmem>>, %arg2: memref<128x128xbf16, #tpu.memory_space<vmem>>, %arg3: memref<1x128xf32, #tpu.memory_space<vmem>>, %arg4: memref<1x128xf32, #tpu.memory_space<vmem>>, %arg5: memref<4x128xf32, #tpu.memory_space<vmem>>) attributes {dimension_semantics = [#tpu.dimension_semantics<parallel>], iteration_bounds = array<i64: 1>, scalar_prefetch = 0 : i64, scratch_operands = 0 : i64, tpu.core_type = #tpu.core_type<tc>, window_params = [{transform_indices = @transform_0, window_bounds = array<i64: 4, 128>}, {pipeline_mode = #tpu.pipeline_mode<synchronous>, transform_indices = @transform_1, window_bounds = array<i64: 128, 128>}, {pipeline_mode = #tpu.pipeline_mode<synchronous>, transform_indices = @transform_2, window_bounds = array<i64: 1, 128>}, {pipeline_mode = #tpu.pipeline_mode<synchronous>, transform_indices = @transform_3, window_bounds = array<i64: 1, 128>}, {transform_indices = @transform_4, window_bounds = array<i64: 4, 128>}]} {
    %c0 = arith.constant 0 : index
    %c0_0 = arith.constant 0 : index
    %0 = vector.load %arg1[%c0, %c0_0] : memref<4x128xf32, #tpu.memory_space<vmem>>, vector<4x128xf32>
    %c0_1 = arith.constant 0 : index
    %c0_2 = arith.constant 0 : index
    %1 = vector.load %arg2[%c0_1, %c0_2] : memref<128x128xbf16, #tpu.memory_space<vmem>>, vector<128x128xbf16>
    %2 = arith.truncf %0 : vector<4x128xf32> to vector<4x128xbf16>
    %3 = arith.extf %2 : vector<4x128xbf16> to vector<4x128xf32>
    %4 = arith.subf %0, %3 : vector<4x128xf32>
    %5 = arith.truncf %4 : vector<4x128xf32> to vector<4x128xbf16>
    %6 = arith.extf %5 : vector<4x128xbf16> to vector<4x128xf32>
    %7 = arith.subf %4, %6 : vector<4x128xf32>
    %8 = arith.truncf %7 : vector<4x128xf32> to vector<4x128xbf16>
    %cst = arith.constant dense<0.000000e+00> : vector<4x128xf32>
    %9 = tpu.matmul %2, %1, %cst {dimension_numbers = #tpu.dot_dimension_numbers<[1], [0], [0], [1], [0, 0, 1, 1], [], []>} : vector<4x128xbf16>, vector<128x128xbf16>, vector<4x128xf32> -> vector<4x128xf32>
    %cst_3 = arith.constant dense<0.000000e+00> : vector<4x128xf32>
    %10 = tpu.matmul %5, %1, %cst_3 {dimension_numbers = #tpu.dot_dimension_numbers<[1], [0], [0], [1], [0, 0, 1, 1], [], []>} : vector<4x128xbf16>, vector<128x128xbf16>, vector<4x128xf32> -> vector<4x128xf32>
    %11 = arith.addf %9, %10 : vector<4x128xf32>
    %cst_4 = arith.constant dense<0.000000e+00> : vector<4x128xf32>
    %12 = tpu.matmul %8, %1, %cst_4 {dimension_numbers = #tpu.dot_dimension_numbers<[1], [0], [0], [1], [0, 0, 1, 1], [], []>} : vector<4x128xbf16>, vector<128x128xbf16>, vector<4x128xf32> -> vector<4x128xf32>
    %13 = arith.addf %11, %12 : vector<4x128xf32>
    %14 = arith.subf %0, %13 : vector<4x128xf32>
    %15 = arith.mulf %14, %14 : vector<4x128xf32>
    %16 = arith.truncf %15 : vector<4x128xf32> to vector<4x128xbf16>
    %17 = arith.extf %16 : vector<4x128xbf16> to vector<4x128xf32>
    %18 = arith.subf %15, %17 : vector<4x128xf32>
    %19 = arith.truncf %18 : vector<4x128xf32> to vector<4x128xbf16>
    %20 = arith.extf %19 : vector<4x128xbf16> to vector<4x128xf32>
    %21 = arith.subf %18, %20 : vector<4x128xf32>
    %22 = arith.truncf %21 : vector<4x128xf32> to vector<4x128xbf16>
    %cst_5 = arith.constant dense<0.000000e+00> : vector<4x128xf32>
    %23 = tpu.matmul %16, %1, %cst_5 {dimension_numbers = #tpu.dot_dimension_numbers<[1], [0], [0], [1], [0, 0, 1, 1], [], []>} : vector<4x128xbf16>, vector<128x128xbf16>, vector<4x128xf32> -> vector<4x128xf32>
    %cst_6 = arith.constant dense<0.000000e+00> : vector<4x128xf32>
    %24 = tpu.matmul %19, %1, %cst_6 {dimension_numbers = #tpu.dot_dimension_numbers<[1], [0], [0], [1], [0, 0, 1, 1], [], []>} : vector<4x128xbf16>, vector<128x128xbf16>, vector<4x128xf32> -> vector<4x128xf32>
    %25 = arith.addf %23, %24 : vector<4x128xf32>
    %cst_7 = arith.constant dense<0.000000e+00> : vector<4x128xf32>
    %26 = tpu.matmul %22, %1, %cst_7 {dimension_numbers = #tpu.dot_dimension_numbers<[1], [0], [0], [1], [0, 0, 1, 1], [], []>} : vector<4x128xbf16>, vector<128x128xbf16>, vector<4x128xf32> -> vector<4x128xf32>
    %27 = arith.addf %25, %26 : vector<4x128xf32>
    %cst_8 = arith.constant 9.99999996E-13 : f32
    %28 = vector.broadcast %cst_8 : f32 to vector<4x128xf32>
    %29 = arith.addf %27, %28 : vector<4x128xf32>
    %30 = math.rsqrt %29 : vector<4x128xf32>
    %31 = arith.mulf %14, %30 : vector<4x128xf32>
    %c0_9 = arith.constant 0 : index
    %c0_10 = arith.constant 0 : index
    %32 = vector.load %arg3[%c0_9, %c0_10] : memref<1x128xf32, #tpu.memory_space<vmem>>, vector<1x128xf32>
    %33 = vector.broadcast %32 : vector<1x128xf32> to vector<4x128xf32>
    %34 = arith.mulf %31, %33 : vector<4x128xf32>
    %c0_11 = arith.constant 0 : index
    %c0_12 = arith.constant 0 : index
    %35 = vector.load %arg4[%c0_11, %c0_12] : memref<1x128xf32, #tpu.memory_space<vmem>>, vector<1x128xf32>
    %36 = vector.broadcast %35 : vector<1x128xf32> to vector<4x128xf32>
    %37 = arith.addf %34, %36 : vector<4x128xf32>
    %c0_13 = arith.constant 0 : index
    %c0_14 = arith.constant 0 : index
    %38 = vector.load %arg5[%c0_13, %c0_14] : memref<4x128xf32, #tpu.memory_space<vmem>>, vector<4x128xf32>
    tpu.vector_store %arg5[%c0_13, %c0_14], %37 {strides = array<i32>} : memref<4x128xf32, #tpu.memory_space<vmem>>, vector<4x128xf32>,
    return
  }
  func.func @transform_0(%arg0: i32) -> (i32, i32) {
    %c0_i32 = arith.constant 0 : i32
    %c0_i32_0 = arith.constant 0 : i32
    return %arg0, %c0_i32 : i32, i32
  }
  func.func @transform_1(%arg0: i32) -> (i32, i32) {
    %c0_i32 = arith.constant 0 : i32
    %c0_i32_0 = arith.constant 0 : i32
    %c0_i32_1 = arith.constant 0 : i32
    return %c0_i32, %c0_i32_0 : i32, i32
  }
  func.func @transform_2(%arg0: i32) -> (i32, i32) {
    %c0_i32 = arith.constant 0 : i32
    %c0_i32_0 = arith.constant 0 : i32
    %c0_i32_1 = arith.constant 0 : i32
    return %c0_i32, %c0_i32_0 : i32, i32
  }
  func.func @transform_3(%arg0: i32) -> (i32, i32) {
    %c0_i32 = arith.constant 0 : i32
    %c0_i32_0 = arith.constant 0 : i32
    %c0_i32_1 = arith.constant 0 : i32
    return %c0_i32, %c0_i32_0 : i32, i32
  }
  func.func @transform_4(%arg0: i32) -> (i32, i32) {
    %c0_i32 = arith.constant 0 : i32
    %c0_i32_0 = arith.constant 0 : i32
    return %arg0, %c0_i32 : i32, i32
  }
}

</mosaic_0001>

<bundles_post_ra>
// kernel: tpu_custom_call.1
= control target key start
LH: loop header
LB: loop body
LE: loop exit
PB: predicated region body
PF: predicated region fallthrough
CT: control target
= control target key end

     0   :  { %9 = vsyncpa [#allocation3], 0  ;;  %s901_s0 = inlined_call_operand.hbm [shape: f32[4,128], index: 0, kind: input, shape index: {}]   ;;  %s902_s1 = inlined_call_operand.hbm [shape: bf16[128,128], index: 1, kind: input, shape index: {}]   ;;  %s903_s2 = inlined_call_operand.vmem [shape: f32[1,128], index: 2, kind: input, shape index: {}]   ;;  %s904_s3 = inlined_call_operand.vmem [shape: f32[1,128], index: 3, kind: input, shape index: {}]   ;;  %s905_s4 = inlined_call_operand.hbm [shape: f32[4,128], index: 4, kind: output, shape index: {}]  }
   0x1   :  { %10 = vsyncpa [#allocation6], 0 }
   0x2   :  { %11 = vsyncpa [#allocation4], 0  ;;  %s685_s15 = smov [#allocation2]   ;;  %s686_s17 = smov [#allocation5]  }
   0x3   :  { %s18_s16 = sshll.u32 %s685_s15, 4  ;;  %s27_s18 = sshll.u32 %s686_s17, 4  ;;  %s19_s16 = int_to_ptr.vmem [resolvable:$true] %s18_s16  ;;  %s717_s18 = int_to_ptr.vmem [resolvable:$true] %s27_s18 }
   0x4   :  { %s613_s21 = scalar_lea.hbm %s901_s0, 64 }
   0x5   :  { %p614_p0 = scmp.ne.s32.totalorder %s901_s0, %s613_s21  ;;  %p617_p1 = scmp.lt.u32.totalorder %s613_s21, %s901_s0 }
   0x7   :  { %p619_p2 = pnand %p617_p1, %p614_p0 }
   0x9   :  { %622 = shalt.err (!%p619_p2)
}
   0xa   :  { %s623_s26 = scalar_lea.vmem %s19_s16, 64  ;;  %p628_p4 = scmp.lt.s32.totalorder %s19_s16, %s19_s16 }
   0xb   :  { %p624_p3 = scmp.ne.s32.totalorder %s19_s16, %s623_s26  ;;  %p629_p5 = scmp.lt.s32.totalorder %s623_s26, %s623_s26 }
   0xd   :  { %p630_p6 = por %p629_p5, %p628_p4 }
   0xf   :  { %p631_p7 = pnand %p630_p6, %p624_p3 }
  0x11   :  { %634 = shalt.err (!%p631_p7)
}
  0x12   :  { %21 = dma.hbm_to_vmem [thread:$0]  %s901_s0, 64, %s19_s16, [#allocation3]  }
  0x13   :  { %s635_s5 = scalar_lea.hbm %s902_s1, 1024 }
  0x14   :  { %p636_p8 = scmp.ne.s32.totalorder %s902_s1, %s635_s5  ;;  %p639_p9 = scmp.lt.u32.totalorder %s635_s5, %s902_s1 }
  0x16   :  { %p641_p10 = pnand %p639_p9, %p636_p8 }
  0x18   :  { %644 = shalt.err (!%p641_p10)
}
  0x19   :  { %s645_s10 = scalar_lea.vmem %s717_s18, 1024  ;;  %p650_p12 = scmp.lt.s32.totalorder %s717_s18, %s717_s18 }
  0x1a   :  { %p646_p11 = scmp.ne.s32.totalorder %s717_s18, %s645_s10  ;;  %p651_p13 = scmp.lt.s32.totalorder %s645_s10, %s645_s10 }
  0x1c   :  { %p652_p0 = por %p651_p13, %p650_p12 }
  0x1e   :  { %p653_p1 = pnand %p652_p0, %p646_p11 }
  0x20   :  { %656 = shalt.err (!%p653_p1)
}
  0x21   :  { %s687_s0 = smov 64   ;;  %s688_s11 = smov 4  }
  0x22   :  { %33 = dma.hbm_to_vmem [thread:$0]  %s902_s1, 1024, %s717_s18, [#allocation6], %s687_s0, %s687_s0, %s688_s11  }
  0x23   :  { %679 = dma.done.wait [#allocation3], 64  }
  0x24   :  { %680 = vsyncadd [#allocation3], 4294967232 }
  0x25   :  { %681 = dma.done.wait [#allocation6], 1024  }
  0x26   :  { %682 = vsyncadd [#allocation6], 4294966272  ;;  %v689_v0 = vmov 0.0   ;;  %vm690_vm0 = vmmov 0   ;;  %v754_v1 = vld [vmem:[#allocation5] sm:$0xff]   ;;  %v757_v2 = vld [vmem:[#allocation5 + $0x8] sm:$0xff]  }
  0x27   :  { %468 = vmatprep.subr.bf16.mxu0 %v689_v0  ;;  %484 = vmatprep.mubr.msk.bf16.mxu0 %vm690_vm0, %v689_v0  ;;  %v763_v3 = vld [vmem:[#allocation5 + $0x10] sm:$0xff]   ;;  %v769_v4 = vld [vmem:[#allocation5 + $0x18] sm:$0xff]   ;;  %v775_v5 = vld [vmem:[#allocation5 + $0x20] sm:$0xff]   ;;  %s691_s17 = smov [#allocation7]  }
  0x28   :  { %528 = vmatprep.subr.bf16.mxu1 %v689_v0  ;;  %544 = vmatprep.mubr.msk.bf16.mxu1 %vm690_vm0, %v689_v0  ;;  %v777_v6 = vld [vmem:[#allocation2] sm:$0xf]  ;;  %v785_v8 = vld [vmem:[#allocation5 + $0x28] sm:$0xff]   ;;  %v791_v10 = vld [vmem:[#allocation5 + $0x30] sm:$0xff]   ;;  %s394_s18 = sshll.u32 %s691_s17, 4  ;;  %s395_s18 = int_to_ptr.vmem [resolvable:$true] %s394_s18 }
  0x29   :  { %469 = vmatpush3.bf16.msra.mxu0 %v754_v1  ;;  %529 = vmatpush3.bf16.msra.mxu1 %v754_v1  ;;  %v62_v7 = vpack.c.bf16 %v777_v6, %v777_v6  ;;  %v798_v12 = vld [vmem:[#allocation5 + $0x38] sm:$0xff]   ;;  %s657_s19 = scalar_lea.vmem %s395_s18, 64  ;;  %p662_p3 = scmp.lt.s32.totalorder %s395_s18, %s395_s18 }
  0x2a   :  { %470 = vmatprep.subr.bf16.mxu0 %v689_v0  ;;  %530 = vmatprep.subr.bf16.mxu1 %v689_v0  ;;  %v412_v46 = vld [vmem:[%s903_s2] ss:$0 sm:$0xff]  ;;  %p658_p2 = scmp.ne.s32.totalorder %s395_s18, %s657_s19  ;;  %p663_p4 = scmp.lt.s32.totalorder %s657_s19, %s657_s19 }
  0x2b   :  { %v63_v9 = vunpack.c.l.bf16 %v62_v7  ;;  %v413_v48 = vld [vmem:[%s904_s3] ss:$0 sm:$0xff] }
  0x2c   :  { %p664_p5 = por %p663_p4, %p662_p3 }
  0x2d   :  { %471 = vmatpush3.bf16.msra.mxu0 %v757_v2  ;;  %531 = vmatpush3.bf16.msra.mxu1 %v757_v2  ;;  %v64_v11 = vsub.f32 %v777_v6, %v63_v9 }
  0x2e   :  { %472 = vmatprep.subr.bf16.mxu0 %v689_v0  ;;  %532 = vmatprep.subr.bf16.mxu1 %v689_v0  ;;  %p665_p6 = pnand %p664_p5, %p658_p2 }
  0x2f   :  { %v65_v13 = vpack.c.bf16 %v64_v11, %v64_v11 }
  0x31   :  { %473 = vmatpush3.bf16.msra.mxu0 %v763_v3  ;;  %533 = vmatpush3.bf16.msra.mxu1 %v763_v3  ;;  %v66_v14 = vunpack.c.l.bf16 %v65_v13 }
  0x32   :  { %474 = vmatprep.subr.bf16.mxu0 %v689_v0  ;;  %534 = vmatprep.subr.bf16.mxu1 %v689_v0 }
  0x33   :  { %v67_v15 = vsub.f32 %v64_v11, %v66_v14 }
  0x35   :  { %475 = vmatpush3.bf16.msra.mxu0 %v769_v4  ;;  %535 = vmatpush3.bf16.msra.mxu1 %v769_v4  ;;  %v68_v16 = vpack.c.bf16 %v67_v15, %v67_v15 }
  0x36   :  { %476 = vmatprep.subr.bf16.mxu0 %v689_v0  ;;  %536 = vmatprep.subr.bf16.mxu1 %v689_v0 }
  0x39   :  { %477 = vmatpush3.bf16.msra.mxu0 %v775_v5  ;;  %537 = vmatpush3.bf16.msra.mxu1 %v775_v5 }
  0x3a   :  { %478 = vmatprep.subr.bf16.mxu0 %v689_v0  ;;  %538 = vmatprep.subr.bf16.mxu1 %v689_v0 }
  0x3d   :  { %479 = vmatpush3.bf16.msra.mxu0 %v785_v8  ;;  %539 = vmatpush3.bf16.msra.mxu1 %v785_v8 }
  0x3e   :  { %480 = vmatprep.subr.bf16.mxu0 %v689_v0  ;;  %540 = vmatprep.subr.bf16.mxu1 %v689_v0 }
  0x41   :  { %481 = vmatpush3.bf16.msra.mxu0 %v791_v10  ;;  %541 = vmatpush3.bf16.msra.mxu1 %v791_v10 }
  0x42   :  { %482 = vmatprep.subr.bf16.mxu0 %v689_v0  ;;  %542 = vmatprep.subr.bf16.mxu1 %v689_v0 }
  0x45   :  { %483 = vmatpush3.bf16.msra.mxu0 %v798_v12  ;;  %543 = vmatpush3.bf16.msra.mxu1 %v798_v12 }
  0x46   :  { %488 = vmatprep.subr.bf16.mxu0 %v689_v0  ;;  %548 = vmatprep.subr.bf16.mxu1 %v689_v0 }
  0x48   :  { %485 = vmatmul.mubr.bf16.vlgmr.msra.gmra.mrb[0].mxu0 %v65_v13 }
  0x49   :  { %489 = vmatpush3.bf16.msra.mxu0 %v754_v1  ;;  %504 = vmatprep.mubr.msk.bf16.mxu0 %vm690_vm0, %v689_v0 }
  0x4a   :  { %490 = vmatprep.subr.bf16.mxu0 %v689_v0 }
  0x4d   :  { %491 = vmatpush3.bf16.msra.mxu0 %v757_v2 }
  0x4e   :  { %492 = vmatprep.subr.bf16.mxu0 %v689_v0 }
  0x51   :  { %493 = vmatpush3.bf16.msra.mxu0 %v763_v3 }
  0x52   :  { %494 = vmatprep.subr.bf16.mxu0 %v689_v0 }
  0x55   :  { %495 = vmatpush3.bf16.msra.mxu0 %v769_v4 }
  0x56   :  { %496 = vmatprep.subr.bf16.mxu0 %v689_v0 }
  0x59   :  { %497 = vmatpush3.bf16.msra.mxu0 %v775_v5 }
  0x5a   :  { %498 = vmatprep.subr.bf16.mxu0 %v689_v0 }
  0x5d   :  { %499 = vmatpush3.bf16.msra.mxu0 %v785_v8 }
  0x5e   :  { %500 = vmatprep.subr.bf16.mxu0 %v689_v0 }
  0x61   :  { %501 = vmatpush3.bf16.msra.mxu0 %v791_v10 }
  0x62   :  { %502 = vmatprep.subr.bf16.mxu0 %v689_v0 }
  0x65   :  { %503 = vmatpush3.bf16.msra.mxu0 %v798_v12 }
  0x66   :  { %508 = vmatprep.subr.bf16.mxu0 %v689_v0 }
  0x68   :  { %505 = vmatmul.mubr.bf16.vlgmr.msra.gmra.mrb[0].mxu0 %v62_v7 }
  0x69   :  { %509 = vmatpush3.bf16.msra.mxu0 %v754_v1  ;;  %524 = vmatprep.mubr.msk.bf16.mxu0 %vm690_vm0, %v689_v0 }
  0x6a   :  { %510 = vmatprep.subr.bf16.mxu0 %v689_v0 }
  0x6d   :  { %511 = vmatpush3.bf16.msra.mxu0 %v757_v2 }
  0x6e   :  { %512 = vmatprep.subr.bf16.mxu0 %v689_v0 }
  0x71   :  { %513 = vmatpush3.bf16.msra.mxu0 %v763_v3 }
  0x72   :  { %514 = vmatprep.subr.bf16.mxu0 %v689_v0 }
  0x75   :  { %515 = vmatpush3.bf16.msra.mxu0 %v769_v4 }
  0x76   :  { %516 = vmatprep.subr.bf16.mxu0 %v689_v0 }
  0x79   :  { %517 = vmatpush3.bf16.msra.mxu0 %v775_v5 }
  0x7a   :  { %518 = vmatprep.subr.bf16.mxu0 %v689_v0 }
  0x7d   :  { %519 = vmatpush3.bf16.msra.mxu0 %v785_v8 }
  0x7e   :  { %520 = vmatprep.subr.bf16.mxu0 %v689_v0 }
  0x81   :  { %521 = vmatpush3.bf16.msra.mxu0 %v791_v10 }
  0x82   :  { %522 = vmatprep.subr.bf16.mxu0 %v689_v0 }
  0x85   :  { %523 = vmatpush3.bf16.msra.mxu0 %v798_v12 }
  0x88   :  { %525 = vmatmul.mubr.bf16.vlgmr.msra.gmra.mrb[0].mxu0 %v68_v16 }
 0x15b   :  { %v231_v17 = vpop.f32.mrb[0].mxu0 }
 0x15c   :  { %v843_v18 = vsub.f32 %v777_v6, %v231_v17  ;;  %v526_v19 = vpop.f32.mrb[1].mxu0 }
 0x15d   :  { %v234_v20 = vpop.f32.mrb[2].mxu0 }
 0x15e   :  { %v239_v21 = vmul.f32 %v843_v18, %v843_v18  ;;  %v527_v22 = vpop.f32.mrb[3].mxu0 }
 0x160   :  { %v240_v23 = vpack.c.bf16 %v239_v21, %v239_v21 }
 0x162   :  { %v241_v24 = vunpack.c.l.bf16 %v240_v23 }
 0x164   :  { %v242_v25 = vsub.f32 %v239_v21, %v241_v24 }
 0x166   :  { %v243_v26 = vpack.c.bf16 %v242_v25, %v242_v25 }
 0x168   :  { %545 = vmatmul.mubr.bf16.vlgmr.msra.gmra.mrb[0].mxu1 %v243_v26  ;;  %v244_v27 = vunpack.c.l.bf16 %v243_v26 }
 0x169   :  { %549 = vmatpush3.bf16.msra.mxu1 %v754_v1  ;;  %564 = vmatprep.mubr.msk.bf16.mxu1 %vm690_vm0, %v689_v0 }
 0x16a   :  { %550 = vmatprep.subr.bf16.mxu1 %v689_v0  ;;  %v245_v28 = vsub.f32 %v242_v25, %v244_v27 }
 0x16c   :  { %v246_v29 = vpack.c.bf16 %v245_v28, %v245_v28 }
 0x16d   :  { %551 = vmatpush3.bf16.msra.mxu1 %v757_v2 }
 0x16e   :  { %552 = vmatprep.subr.bf16.mxu1 %v689_v0 }
 0x171   :  { %553 = vmatpush3.bf16.msra.mxu1 %v763_v3 }
 0x172   :  { %554 = vmatprep.subr.bf16.mxu1 %v689_v0 }
 0x175   :  { %555 = vmatpush3.bf16.msra.mxu1 %v769_v4 }
 0x176   :  { %556 = vmatprep.subr.bf16.mxu1 %v689_v0 }
 0x179   :  { %557 = vmatpush3.bf16.msra.mxu1 %v775_v5 }
 0x17a   :  { %558 = vmatprep.subr.bf16.mxu1 %v689_v0 }
 0x17d   :  { %559 = vmatpush3.bf16.msra.mxu1 %v785_v8 }
 0x17e   :  { %560 = vmatprep.subr.bf16.mxu1 %v689_v0 }
 0x181   :  { %561 = vmatpush3.bf16.msra.mxu1 %v791_v10 }
 0x182   :  { %562 = vmatprep.subr.bf16.mxu1 %v689_v0 }
 0x185   :  { %563 = vmatpush3.bf16.msra.mxu1 %v798_v12 }
 0x186   :  { %568 = vmatprep.subr.bf16.mxu1 %v689_v0 }
 0x188   :  { %565 = vmatmul.mubr.bf16.vlgmr.msra.gmra.mrb[4].mxu1 %v240_v23 }
 0x189   :  { %569 = vmatpush3.bf16.msra.mxu1 %v754_v1  ;;  %584 = vmatprep.mubr.msk.bf16.mxu1 %vm690_vm0, %v689_v0 }
 0x18a   :  { %570 = vmatprep.subr.bf16.mxu1 %v689_v0 }
 0x18d   :  { %571 = vmatpush3.bf16.msra.mxu1 %v757_v2 }
 0x18e   :  { %572 = vmatprep.subr.bf16.mxu1 %v689_v0 }
 0x191   :  { %573 = vmatpush3.bf16.msra.mxu1 %v763_v3 }
 0x192   :  { %574 = vmatprep.subr.bf16.mxu1 %v689_v0 }
 0x195   :  { %575 = vmatpush3.bf16.msra.mxu1 %v769_v4 }
 0x196   :  { %576 = vmatprep.subr.bf16.mxu1 %v689_v0 }
 0x199   :  { %577 = vmatpush3.bf16.msra.mxu1 %v775_v5 }
 0x19a   :  { %578 = vmatprep.subr.bf16.mxu1 %v689_v0 }
 0x19d   :  { %579 = vmatpush3.bf16.msra.mxu1 %v785_v8 }
 0x19e   :  { %580 = vmatprep.subr.bf16.mxu1 %v689_v0 }
 0x1a1   :  { %581 = vmatpush3.bf16.msra.mxu1 %v791_v10 }
 0x1a2   :  { %582 = vmatprep.subr.bf16.mxu1 %v689_v0 }
 0x1a5   :  { %583 = vmatpush3.bf16.msra.mxu1 %v798_v12 }
 0x1a8   :  { %585 = vmatmul.mubr.bf16.vlgmr.msra.gmra.mrb[8].mxu1 %v246_v29 }
 0x23b   :  { %v281_v30 = vpop.f32.mrb[0].mxu1 }
 0x23c   :  { %v546_v31 = vpop.f32.mrb[1].mxu1 }
 0x23d   :  { %v284_v32 = vpop.f32.mrb[2].mxu1 }
 0x23e   :  { %v547_v33 = vpop.f32.mrb[3].mxu1 }
 0x25b   :  { %v321_v34 = vpop.f32.mrb[4].mxu1 }
 0x25c   :  { %v322_v35 = vadd.f32 %v321_v34, %v281_v30  ;;  %v566_v36 = vpop.f32.mrb[5].mxu1 }
 0x25d   :  { %v324_v37 = vpop.f32.mrb[6].mxu1 }
 0x25e   :  { %v567_v38 = vpop.f32.mrb[7].mxu1 }
 0x27b   :  { %v361_v39 = vpop.f32.mrb[8].mxu1 }
 0x27c   :  { %v367_v40 = vadd.f32 %v361_v39, %v322_v35  ;;  %v586_v41 = vpop.f32.mrb[9].mxu1 }
 0x27d   :  { %v364_v42 = vpop.f32.mrb[10].mxu1 }
 0x27e   :  { %v368_v43 = vadd.f32 1e-12, %v367_v40  ;;  %v587_v44 = vpop.f32.mrb[11].mxu1 }
 0x280   :  { %611 = vrsqrt.f32 %v368_v43 }
 0x28a   :  { %v612_v45 = vpop.eup %611 }
 0x28b   :  { %v370_v47 = vmul.f32 %v612_v45, %v843_v18 }
 0x28d   :  { %v378_v49 = vmul.f32 %v412_v46, %v370_v47 }
 0x28f   :  { %v386_v50 = vadd.f32 %v413_v48, %v378_v49 }
 0x291   :  { %387 = vst [vmem:[#allocation7] sm:$0xf] %v386_v50 }
 0x292   :  { %668 = shalt.err (!%p665_p6)
}
 0x293   :  { %s669_s21 = scalar_lea.hbm %s905_s4, 64 }
 0x294   :  { %p670_p7 = scmp.ne.s32.totalorder %s905_s4, %s669_s21  ;;  %p673_p8 = scmp.lt.u32.totalorder %s669_s21, %s905_s4 }
 0x296   :  { %p675_p9 = pnand %p673_p8, %p670_p7 }
 0x298   :  { %678 = shalt.err (!%p675_p9)
}
 0x299   :  { %397 = dma.vmem_to_hbm [thread:$0]  %s395_s18, 64, %s905_s4, [#allocation4]  }
 0x29a   :  { %683 = dma.done.wait [#allocation4], 64  }
 0x29b   :  { %684 = vsyncadd [#allocation4], 4294967232 }
 0x29c   :  { %401 = vsyncpa [#allocation3], 1 }
 0x29d   :  { %402 = vsyncpa [#allocation6], 1 }
 0x29e   :  { %403 = vsyncpa [#allocation4], 1 }

</bundles_post_ra>
